<compile_context>
chip_gen: v7x
topology: tpu7x:2x2x1
jax: 0.10.0
libtpu: 0.0.40
codegen_flags: <defaults>
</compile_context>

<pallas_src>
import jax
import jax.numpy as jnp
import numpy as np
from jax.experimental import pallas as pl
from jax.experimental.pallas import tpu as pltpu

# Hyperparameters from the module defaults.
DIM_INPUT = 16
DIM_OUTPUT = 18
NUM_FREQ = 42
L = NUM_FREQ + 1                  # 43 complex autocorrelation params (k = 0..m)
TWO_L = 2 * L                     # PyTorch Linear output width = 86
FUSED_N = 2 * DIM_OUTPUT          # [Re(P) | Im(P)] at the 18 bin centers = 36
INIT_DENOM_WEIGHT = 100.0
INIT_DENOM_BIAS = 100.0


def _round_up(n, m):
    return ((n + m - 1) // m) * m


def fourier_softmax_kernel(x_ref, a_ref, c_ref, out_ref):
    """out = softmax(log pdf) == |P(b_j)|^2 / sum_j |P(b_j)|^2 (fully fused)."""
    # Single tiny MXU matmul: (blk, 16) @ (16, 36) + (1, 36) bias.
    uv = jnp.dot(x_ref[...], a_ref[...],
                 preferred_element_type=jnp.float32,
                 precision=jax.lax.Precision.HIGHEST) + c_ref[...]
    u = uv[:, :DIM_OUTPUT]                      # Re(P(b_j))
    v = uv[:, DIM_OUTPUT:]                      # Im(P(b_j))
    q = u * u + v * v                           # unnormalized pdf (VPU)
    denom = jnp.maximum(jnp.sum(q, axis=-1, keepdims=True), 1e-30)
    out_ref[...] = q * (1.0 / denom)            # exact divide: rows sum to 1


def _fourier_eval_matrix():
    """(2L, 36) map from [r | s] to [Re(P(b_j)) | Im(P(b_j))], built in f64."""
    edges = np.linspace(-1.0, 1.0, DIM_OUTPUT + 1)
    centers = (edges[:-1] + edges[1:]) / 2.0                  # (18,)
    n = np.arange(L, dtype=np.float64)                        # (L,)
    phase = np.pi * n[:, None] * centers[None, :]             # (L, 18)
    C, S = np.cos(phase), np.sin(phase)
    # p = r + i*s :  Re(P) = r@C - s@S ,  Im(P) = r@S + s@C
    top = np.concatenate([C, S], axis=1)                      # r rows  (L, 36)
    bot = np.concatenate([-S, C], axis=1)                     # s rows  (L, 36)
    return np.concatenate([top, bot], axis=0).astype(np.float32)   # (2L, 36)


def test_network_forward(x, W, b, *, block_b=2048):
    """x: (B, 16) f32; W: (2*(m+1), 16), b: (2*(m+1),) in PyTorch Linear layout."""
    B = x.shape[0]

    # --- batch tiling -------------------------------------------------------
    # Large tiles amortize the ~0.35us/grid-step overhead; when the batch fits
    # in one tile, split it in two so v7x's 2 TensorCores both get work.
    B8 = _round_up(max(B, 8), 8)
    blk = min(block_b, B8)
    if blk >= B8 and B8 >= 16:
        blk = _round_up(B8 // 2, 8)
    blk = max(blk, 8)
    B_pad = _round_up(B8, blk)
    if B_pad != B:
        x = jnp.pad(x, ((0, B_pad - B), (0, 0)))

    # --- fold ALL parameters/constants into one (16, 36) matmul -------------
    hi = jax.lax.Precision.HIGHEST
    M = jnp.asarray(_fourier_eval_matrix())                   # (86, 36)
    A = jnp.dot(W.T.astype(jnp.float32), M, precision=hi)     # (16, 36)
    c = jnp.dot(b.astype(jnp.float32)[None, :], M, precision=hi)  # (1, 36)

    kernel = pl.pallas_call(
        fourier_softmax_kernel,
        out_shape=jax.ShapeDtypeStruct((B_pad, DIM_OUTPUT), jnp.float32),
        grid_spec=pltpu.PrefetchScalarGridSpec(
            num_scalar_prefetch=0,
            grid=(B_pad // blk,),
            in_specs=[
                pl.BlockSpec((blk, DIM_INPUT), lambda i: (i, 0)),
                pl.BlockSpec((DIM_INPUT, FUSED_N), lambda i: (0, 0)),   # constant
                pl.BlockSpec((1, FUSED_N), lambda i: (0, 0)),           # constant
            ],
            out_specs=pl.BlockSpec((blk, DIM_OUTPUT), lambda i: (i, 0)),
        ),
        compiler_params=pltpu.CompilerParams(
            dimension_semantics=("parallel",)),
    )
    out = kernel(x.astype(jnp.float32), A, c)
    return out[:B] if B_pad != B else out


def reference_forward(x, W, b):
    """Pure-JAX mirror of the PyTorch forward (complex autocorrelation path)."""
    hi = jax.lax.Precision.HIGHEST
    u = jnp.dot(x, W.T, precision=hi) + b
    p = u[:, :L] + 1j * u[:, L:]
    a = jnp.stack(
        [jnp.sum(p[:, k:] * jnp.conj(p[:, :L - k]), axis=-1) for k in range(L)],
        axis=-1)
    c = a[:, 1:] / jnp.real(a[:, 0:1])
    edges = jnp.linspace(-1.0, 1.0, DIM_OUTPUT + 1)
    centers = (edges[:-1] + edges[1:]) / 2.0
    freqs = jnp.arange(1, L, dtype=jnp.float32)
    ex = jnp.exp(1j * jnp.pi * freqs[None, None, :] * centers[None, :, None])
    pdf = 0.5 + jnp.real(jnp.sum(c[:, None, :] * ex, axis=-1))
    return jax.nn.softmax(jnp.log(pdf), axis=-1)


if __name__ == "__main__":
    key = jax.random.PRNGKey(0)
    kx, kw, kb = jax.random.split(key, 3)

    B = 64
    x = jax.random.normal(kx, (B, DIM_INPUT), dtype=jnp.float32)

    # Deterministic params mimicking nn.Linear default U(-1/sqrt(fan_in), ...)
    # followed by the Fourier_Head scaling by 1/init_denominator_{weight,bias}.
    bound = 1.0 / (DIM_INPUT ** 0.5)
    W = (jax.random.uniform(kw, (TWO_L, DIM_INPUT), minval=-bound, maxval=bound)
         / INIT_DENOM_WEIGHT).astype(jnp.float32)
    b = (jax.random.uniform(kb, (TWO_L,), minval=-bound, maxval=bound)
         / INIT_DENOM_BIAS).astype(jnp.float32)

    out = jax.block_until_ready(test_network_forward(x, W, b))
    ref = reference_forward(x, W, b)

    assert out.shape == (B, DIM_OUTPUT)
    assert bool(jnp.all(jnp.isfinite(out)))
    # Output rows are a probability distribution.
    np.testing.assert_allclose(np.asarray(out).sum(-1), 1.0, rtol=1e-5, atol=1e-5)
    np.testing.assert_allclose(np.asarray(out), np.asarray(ref),
                               rtol=5e-3, atol=3e-4)
    print("KERNEL_OK")
</pallas_src>

<mosaic_0001>
module attributes {stable_mosaic.version = 11 : i64} {
  func.func @fourier_softmax_kernel(%arg0: i32, %arg1: memref<32x16xf32, #tpu.memory_space<vmem>>, %arg2: memref<16x36xf32, #tpu.memory_space<vmem>>, %arg3: memref<1x36xf32, #tpu.memory_space<vmem>>, %arg4: memref<32x18xf32, #tpu.memory_space<vmem>>) attributes {dimension_semantics = [#tpu.dimension_semantics<parallel>], iteration_bounds = array<i64: 2>, scalar_prefetch = 0 : i64, scratch_operands = 0 : i64, tpu.core_type = #tpu.core_type<tc>, window_params = [{transform_indices = @transform_0, window_bounds = array<i64: 32, 16>}, {pipeline_mode = #tpu.pipeline_mode<synchronous>, transform_indices = @transform_1, window_bounds = array<i64: 16, 36>}, {pipeline_mode = #tpu.pipeline_mode<synchronous>, transform_indices = @transform_2, window_bounds = array<i64: 1, 36>}, {transform_indices = @transform_3, window_bounds = array<i64: 32, 18>}]} {
    %c0 = arith.constant 0 : index
    %c0_0 = arith.constant 0 : index
    %0 = vector.load %arg1[%c0, %c0_0] : memref<32x16xf32, #tpu.memory_space<vmem>>, vector<32x16xf32>
    %c0_1 = arith.constant 0 : index
    %c0_2 = arith.constant 0 : index
    %1 = vector.load %arg2[%c0_1, %c0_2] : memref<16x36xf32, #tpu.memory_space<vmem>>, vector<16x36xf32>
    %cst = arith.constant dense<0.000000e+00> : vector<32x36xf32>
    %2 = tpu.matmul %0, %1, %cst {dimension_numbers = #tpu.dot_dimension_numbers<[1], [0], [0], [1], [0, 0, 1, 1], [], []>, precision = #tpu.contract_precision<fp32>} : vector<32x16xf32>, vector<16x36xf32>, vector<32x36xf32> -> vector<32x36xf32>
    %c0_3 = arith.constant 0 : index
    %c0_4 = arith.constant 0 : index
    %3 = vector.load %arg3[%c0_3, %c0_4] : memref<1x36xf32, #tpu.memory_space<vmem>>, vector<1x36xf32>
    %4 = vector.broadcast %3 : vector<1x36xf32> to vector<32x36xf32>
    %5 = arith.addf %2, %4 : vector<32x36xf32>
    %6 = vector.extract_strided_slice %5 {offsets = [0, 0], sizes = [32, 18], strides = [1, 1]} : vector<32x36xf32> to vector<32x18xf32>
    %7 = vector.extract_strided_slice %5 {offsets = [0, 18], sizes = [32, 18], strides = [1, 1]} : vector<32x36xf32> to vector<32x18xf32>
    %8 = arith.mulf %6, %6 : vector<32x18xf32>
    %9 = arith.mulf %7, %7 : vector<32x18xf32>
    %10 = arith.addf %8, %9 : vector<32x18xf32>
    %cst_5 = arith.constant dense<0.000000e+00> : vector<32xf32>
    %11 = vector.multi_reduction <add>, %10, %cst_5 [1] : vector<32x18xf32> to vector<32xf32>
    %12 = vector.shape_cast %11 : vector<32xf32> to vector<32x1xf32>
    %cst_6 = arith.constant 1.000000e-30 : f32
    %13 = vector.broadcast %cst_6 : f32 to vector<32x1xf32>
    %14 = arith.maximumf %12, %13 : vector<32x1xf32>
    %cst_7 = arith.constant 1.000000e+00 : f32
    %15 = vector.broadcast %cst_7 : f32 to vector<32x1xf32>
    %16 = arith.divf %15, %14 : vector<32x1xf32>
    %17 = vector.broadcast %16 : vector<32x1xf32> to vector<32x18xf32>
    %18 = arith.mulf %10, %17 : vector<32x18xf32>
    %c0_8 = arith.constant 0 : index
    %c0_9 = arith.constant 0 : index
    %19 = vector.load %arg4[%c0_8, %c0_9] : memref<32x18xf32, #tpu.memory_space<vmem>>, vector<32x18xf32>
    tpu.vector_store %arg4[%c0_8, %c0_9], %18 {strides = array<i32>} : memref<32x18xf32, #tpu.memory_space<vmem>>, vector<32x18xf32>,
    return
  }
  func.func @transform_0(%arg0: i32) -> (i32, i32) {
    %c0_i32 = arith.constant 0 : i32
    %c0_i32_0 = arith.constant 0 : i32
    return %arg0, %c0_i32 : i32, i32
  }
  func.func @transform_1(%arg0: i32) -> (i32, i32) {
    %c0_i32 = arith.constant 0 : i32
    %c0_i32_0 = arith.constant 0 : i32
    %c0_i32_1 = arith.constant 0 : i32
    return %c0_i32, %c0_i32_0 : i32, i32
  }
  func.func @transform_2(%arg0: i32) -> (i32, i32) {
    %c0_i32 = arith.constant 0 : i32
    %c0_i32_0 = arith.constant 0 : i32
    %c0_i32_1 = arith.constant 0 : i32
    return %c0_i32, %c0_i32_0 : i32, i32
  }
  func.func @transform_3(%arg0: i32) -> (i32, i32) {
    %c0_i32 = arith.constant 0 : i32
    %c0_i32_0 = arith.constant 0 : i32
    return %arg0, %c0_i32 : i32, i32
  }
}

</mosaic_0001>

<bundles_post_ra>
// kernel: tpu_custom_call.1
= control target key start
LH: loop header
LB: loop body
LE: loop exit
PB: predicated region body
PF: predicated region fallthrough
CT: control target
= control target key end

     0   :  { %s1103_s12 = smov 0   ;;  %s1156_s0 = inlined_call_operand.vmem [shape: f32[64,16], index: 0, kind: input, shape index: {}]   ;;  %s1157_s1 = inlined_call_operand.vmem [shape: f32[16,36], index: 1, kind: input, shape index: {}]   ;;  %s1158_s2 = inlined_call_operand.vmem [shape: f32[1,36], index: 2, kind: input, shape index: {}]   ;;  %s1159_s3 = inlined_call_operand.vmem [shape: f32[64,18], index: 3, kind: output, shape index: {}]  }
   0x1 LB: > { %s901_s13 = sadd.s32 4294967295, %s1080_s12   ;;  %p905_p0 = scmp.ge.s32.totalorder %s1080_s12, 1  ;;  %s1080_s12 = sphi %s1103_s12, %s13_s12  }
   0x2   : > { %p138_p1 = scmp.lt.s32.totalorder %s1080_s12, 3 }
   0x4   : > { %p139_p2 = pnand %p905_p0, %p138_p1 }
   0x5   : > { %v178_v0 = vld [vmem:[%s1157_s1] sm:$0xff] (!%p139_p2)  ;;  %v179_v1 = vld [vmem:[%s1157_s1 + $0x8] sm:$0xff] (!%p139_p2)  ;;  %s906_s18 = sshll.u32 (!%p139_p2), %s901_s13, 2  ;;  %vm187_vm0 = vcmask (!%p139_p2), 130048   ;;  %s1082_s25 = smov (!%p139_p2), 110   ;;  %vm812_vm1 = vcmask (!%p139_p2), 146432  }
   0x6   : > { %142 = sbr.rel (%p139_p2) target bundleno = 548 (0x224), region = 32  ;;  %v201_v2 = vand.u32 (!%p139_p2), 4294901760, %v178_v0  ;;  %v204_v3 = vand.u32 (!%p139_p2), 4294901760, %v179_v1  ;;  %p163_p3 = scmp.lt.s32.totalorder (!%p139_p2), %s906_s18, 7  ;;  %v910_v46 = vld [vmem:[%s1158_s2] ss:$0 sm:$0xff] (!%p139_p2) }
   0x8   : > { %v1117_v4 = vpack.c.bf16 (!%p139_p2), %v204_v3, %v201_v2  ;;  %v309_v5 = vsub.f32 (!%p139_p2), %v178_v0, %v201_v2  ;;  %v316_v6 = vsub.f32 (!%p139_p2), %v179_v1, %v204_v3 }
   0xa   : > { %1022 = vmatprep.subr.bf16.mxu0 (!%p139_p2), %v1117_v4  ;;  %1010 = vmatprep.subr.bf16.mxu1 (!%p139_p2), %v1117_v4  ;;  %v310_v7 = vand.u32 (!%p139_p2), 4294901760, %v309_v5  ;;  %v317_v8 = vand.u32 (!%p139_p2), 4294901760, %v316_v6  ;;  %v1017_v42 = vpack.c.bf16 (!%p139_p2), %v316_v6, %v309_v5 }
   0xb   : > { %1024 = vmatpush3.bf16.msra.mxu0 (!%p139_p2), %v1117_v4  ;;  %1012 = vmatpush3.bf16.msra.mxu1 (!%p139_p2), %v1117_v4 }
   0xc   : > { %v311_v11 = vsub.f32 (!%p139_p2), %v309_v5, %v310_v7  ;;  %v318_v12 = vsub.f32 (!%p139_p2), %v316_v6, %v317_v8  ;;  %v1025_v14 = vpack.c.bf16 (!%p139_p2), %v317_v8, %v310_v7 }
   0xd   : > { %s1161_s18 = smov (!%p163_p3, %s906_s18), 7 }
   0xe   : > { %s907_s19 = sshll.u32 %s1161_s18, 3  ;;  %v312_v21 = vand.u32 4294901760, %v311_v11  ;;  %v319_v22 = vand.u32 4294901760, %v318_v12  ;;  %1026 = vmatprep.subr.bf16.mxu0 %v1025_v14 }
   0xf   : > { %s166_s22 = scalar_lea.vmem %s1156_s0, %s907_s19  ;;  %s172_s28 = scalar_lea.vmem %s1159_s3, %s907_s19 }
  0x10   : > { %v174_v9 = vld [vmem:[%s166_s22] sm:$0xff]  ;;  %v175_v10 = vld [vmem:[%s166_s22 + $0x8] sm:$0xff]  ;;  %v176_v13 = vld [vmem:[%s166_s22 + $0x10] sm:$0xff]  ;;  %v1013_v27 = vpack.c.bf16 %v319_v22, %v312_v21 }
  0x11   : > { %v189_v15 = vsel %vm187_vm0, %v174_v9, 0  ;;  %v192_v16 = vsel %vm187_vm0, %v175_v10, 0  ;;  %v195_v17 = vsel %vm187_vm0, %v176_v13, 0  ;;  %v177_v18 = vld [vmem:[%s166_s22 + $0x18] sm:$0xff] }
  0x12   : > { %v267_v19 = vand.u32 4294901760, %v189_v15  ;;  %v277_v20 = vand.u32 4294901760, %v192_v16  ;;  %v287_v23 = vand.u32 4294901760, %v195_v17  ;;  %v198_v24 = vsel %vm187_vm0, %v177_v18, 0  ;;  %1014 = vmatprep.subr.bf16.mxu1 %v1013_v27 }
  0x13   : > { %v297_v28 = vand.u32 4294901760, %v198_v24 }
  0x14   : > { %v268_v25 = vsub.f32 %v189_v15, %v267_v19  ;;  %v278_v26 = vsub.f32 %v192_v16, %v277_v20  ;;  %v288_v29 = vsub.f32 %v195_v17, %v287_v23 }
  0x15   : > { %v298_v32 = vsub.f32 %v198_v24, %v297_v28 }
  0x16   : > { %v269_v30 = vand.u32 4294901760, %v268_v25  ;;  %v279_v31 = vand.u32 4294901760, %v278_v26  ;;  %v289_v33 = vand.u32 4294901760, %v288_v29 }
  0x17   : > { %v299_v36 = vand.u32 4294901760, %v298_v32 }
  0x18   : > { %983 = vmatprep.mubr.f32.mxu0 %v269_v30  ;;  %v270_v34 = vsub.f32 %v268_v25, %v269_v30  ;;  %v280_v35 = vsub.f32 %v278_v26, %v279_v31  ;;  %v290_v37 = vsub.f32 %v288_v29, %v289_v33 }
  0x19   : > { %984 = vmatmul.mubr.f32.vlgmr.msra.gmra.mrb[0].mxu0 %v279_v31  ;;  %v300_v40 = vsub.f32 %v298_v32, %v299_v36 }
  0x1a   : > { %v271_v38 = vand.u32 4294901760, %v270_v34  ;;  %986 = vmatprep.mubr.f32.mxu0 %v289_v33  ;;  %v281_v39 = vand.u32 4294901760, %v280_v35  ;;  %1028 = vmatpush3.bf16.msra.mxu0 %v1025_v14  ;;  %v291_v41 = vand.u32 4294901760, %v290_v37 }
  0x1b   : > { %1030 = vmatprep.subr.bf16.mxu0 %v1117_v4  ;;  %v301_v43 = vand.u32 4294901760, %v300_v40 }
  0x1c   : > { %953 = vmatprep.mubr.f32.mxu1 %v271_v38 }
  0x1d   : > { %954 = vmatmul.mubr.f32.vlgmr.msra.gmra.mrb[0].mxu1 %v281_v39  ;;  %987 = vmatmul.mubr.f32.gmra.mrb[2].mxu0 %v299_v36 }
  0x1e   : > { %1016 = vmatpush3.bf16.msra.mxu1 %v1013_v27  ;;  %956 = vmatprep.mubr.f32.mxu1 %v291_v41 }
  0x1f   : > { %993 = vmatprep.mubr.f32.mxu0 %v267_v19  ;;  %1018 = vmatprep.subr.bf16.mxu1 %v1017_v42 }
  0x21   : > { %957 = vmatmul.mubr.f32.gmra.mrb[2].mxu1 %v301_v43  ;;  %994 = vmatmul.mubr.f32.vlgmr.msra.gmra.mrb[0].mxu0 %v277_v20 }
  0x22   : > { %963 = vmatprep.mubr.f32.mxu1 %v267_v19  ;;  %996 = vmatprep.mubr.f32.mxu0 %v287_v23 }
  0x23   : > { %1032 = vmatpush3.bf16.msra.mxu0 %v1117_v4 }
  0x25   : > { %964 = vmatmul.mubr.f32.vlgmr.msra.gmra.mrb[0].mxu1 %v277_v20  ;;  %997 = vmatmul.mubr.f32.gmra.mrb[2].mxu0 %v297_v28 }
  0x26   : > { %1020 = vmatpush3.bf16.msra.mxu1 %v1017_v42  ;;  %966 = vmatprep.mubr.f32.mxu1 %v287_v23 }
  0x27   : > { %1003 = vmatprep.mubr.f32.mxu0 %v267_v19 }
  0x29   : > { %967 = vmatmul.mubr.f32.gmra.mrb[2].mxu1 %v297_v28  ;;  %1004 = vmatmul.mubr.f32.vlgmr.msra.gmra.mrb[0].mxu0 %v277_v20 }
  0x2a   : > { %973 = vmatprep.mubr.f32.mxu1 %v268_v25  ;;  %1006 = vmatprep.mubr.f32.mxu0 %v287_v23 }
  0x2d   : > { %974 = vmatmul.mubr.f32.vlgmr.msra.gmra.mrb[0].mxu1 %v278_v26  ;;  %1007 = vmatmul.mubr.f32.gmra.mrb[2].mxu0 %v297_v28 }
  0x2e   : > { %976 = vmatprep.mubr.f32.mxu1 %v288_v29 }
  0x31   : > { %977 = vmatmul.mubr.f32.gmra.mrb[2].mxu1 %v298_v32 }
  0xfc   : > { %v1005_v44 = vpop.f32.mrb[0].mxu0 }
  0xfd   : > { %v766_v45 = vpop.f32.mrb[1].mxu0 }
 0x100   : > { %v975_v47 = vpop.f32.mrb[0].mxu1  ;;  %v1008_v48 = vpop.f32.mrb[2].mxu0 }
 0x101   : > { %v1033_v49 = vadd.f32 %v975_v47, %v910_v46  ;;  %v478_v50 = vpop.f32.mrb[1].mxu1  ;;  %v778_v51 = vpop.f32.mrb[3].mxu0 }
 0x102   : > { %v1035_v52 = vadd.f32 %v910_v46, %v478_v50 }
 0x103   : > { %v1034_v53 = vadd.f32 %v1033_v49, %v1005_v44 }
 0x104   : > { %v978_v54 = vpop.f32.mrb[2].mxu1  ;;  %v1036_v55 = vadd.f32 %v1035_v52, %v766_v45 }
 0x105   : > { %v1037_v56 = vadd.f32 %v978_v54, %v910_v46  ;;  %v492_v57 = vpop.f32.mrb[3].mxu1  ;;  %v789_v62 = vmul.f32 %v1034_v53, %v1034_v53 }
 0x106   : > { %v1039_v58 = vadd.f32 %v910_v46, %v492_v57  ;;  %v788_v59 = vmul.f32 %v1036_v55, %v1036_v55 }
 0x107   : > { %v1038_v60 = vadd.f32 %v1037_v56, %v1008_v48 }
 0x108   : > { %796 = vrot.lane.b32.xlu0 %v788_v59, %s1082_s25  ;;  %v1040_v61 = vadd.f32 %v1039_v58, %v778_v51 }
 0x109   : > { %v791_v0 = vmul.f32 %v1038_v60, %v1038_v60 }
 0x10a   : > { %v790_v63 = vmul.f32 %v1040_v61, %v1040_v61 }
 0x10c   : > { %798 = vrot.lane.b32.xlu0 %v789_v62, %s1082_s25  ;;  %800 = vrot.lane.b32.xlu1 %v790_v63, %s1082_s25 }
 0x110   : > { %802 = vrot.lane.b32.xlu1 %v791_v0, %s1082_s25 }
 0x17a   : > { %v797_v1 = vpop.permute.xlu0 %796 }
 0x17b   : > { %v808_v2 = vadd.f32 %v797_v1, %v788_v59 }
 0x17d   : > { %v813_v3 = vsel %vm812_vm1, %v808_v2, 0.0 }
 0x17e   : > { %814 = vadd.xlane.f32.xlu0 %v813_v3  ;;  %v799_v4 = vpop.permute.xlu0 %798  ;;  %v801_v5 = vpop.permute.xlu1 %800 }
 0x17f   : > { %v809_v6 = vadd.f32 %v799_v4, %v789_v62  ;;  %v810_v7 = vadd.f32 %v801_v5, %v790_v63 }
 0x181   : > { %v816_v8 = vsel %vm812_vm1, %v809_v6, 0.0  ;;  %v819_v9 = vsel %vm812_vm1, %v810_v7, 0.0 }
 0x182   : > { %817 = vadd.xlane.f32.xlu1 %v816_v8  ;;  %820 = vadd.xlane.f32.xlu0 %v819_v9  ;;  %v803_v10 = vpop.permute.xlu1 %802 }
 0x183   : > { %v811_v11 = vadd.f32 %v803_v10, %v791_v0 }
 0x185   : > { %v822_v12 = vsel %vm812_vm1, %v811_v11, 0.0 }
 0x186   : > { %823 = vadd.xlane.f32.xlu0 %v822_v12 }
 0x20b   : > { %v815_v13 = vpop.xlane.xlu0 %814 }
 0x20c   : > { %v825_v14 = vmax.f32 %v815_v13, 1e-30 }
 0x20e   : > { %1066 = vrcp.f32 %v825_v14 }
 0x20f   : > { %v821_v15 = vpop.xlane.xlu0 %820  ;;  %v818_v16 = vpop.xlane.xlu1 %817 }
 0x210   : > { %v827_v17 = vmax.f32 %v821_v15, 1e-30  ;;  %v826_v18 = vmax.f32 %v818_v16, 1e-30 }
 0x212   : > { %1068 = vrcp.f32 %v827_v17 }
 0x213   : > { %1070 = vrcp.f32 %v826_v18  ;;  %v824_v19 = vpop.xlane.xlu0 %823 }
 0x214   : > { %v828_v20 = vmax.f32 %v824_v19, 1e-30 }
 0x216   : > { %1072 = vrcp.f32 %v828_v20 }
 0x218   : > { %v1067_v21 = vpop.eup %1066 }
 0x219   : > { %v837_v22 = vmul.f32 %v1067_v21, %v808_v2 }
 0x21b   : > { %841 = vst.msk [vmem:[%s172_s28] sm:$0xff] %vm812_vm1, %v837_v22 }
 0x21c   : > { %v1069_v23 = vpop.eup %1068 }
 0x21d   : > { %v1071_v24 = vpop.eup %1070  ;;  %v839_v25 = vmul.f32 %v1069_v23, %v810_v7 }
 0x21e   : > { %v838_v26 = vmul.f32 %v1071_v24, %v809_v6 }
 0x21f   : > { %843 = vst.msk [vmem:[%s172_s28 + $0x10] sm:$0xff] %vm812_vm1, %v839_v25 }
 0x220   : > { %v1073_v27 = vpop.eup %1072  ;;  %842 = vst.msk [vmem:[%s172_s28 + $0x8] sm:$0xff] %vm812_vm1, %v838_v26 }
 0x221   : > { %v840_v28 = vmul.f32 %v1073_v27, %v811_v11 }
 0x223   : > { %844 = vst.msk [vmem:[%s172_s28 + $0x18] sm:$0xff] %vm812_vm1, %v840_v28 }
 0x224 PF: > { %s13_s12 = sadd.s32 1, %s1080_s12  }
 0x225   : > { %p10_p4 = scmp.ge.s32.totalorder %s13_s12, 4  }
 0x227   :  { %12 = sbr.rel (!%p10_p4) target bundleno = 1 (0x1), region = 62 }

</bundles_post_ra>
